<compile_context>
chip_gen: v6e
topology: v6e:2x2x1
jax: 0.10.0
libtpu: 0.0.40
codegen_flags: <defaults>
</compile_context>

<pallas_src>
import jax
import jax.numpy as jnp
from jax.experimental import pallas as pl
from jax.experimental.pallas import tpu as pltpu

# Fixed weights exactly as in the PyTorch module __init__ (compile-time consts).
W1 = ((1.0, 1.0, 1.0),
      (1.0, -1.0, 1.0))          # (2, 3)
W2 = ((1.0, 0.0),
      (-1.0, 1.0),
      (0.0, 1.0))                # (3, 2)

W1_ARR = jnp.array(W1, dtype=jnp.float32)
W2_ARR = jnp.array(W2, dtype=jnp.float32)


def _net_kernel(x_ref, o_ref):
    """x_ref: (2, TILE_N) lane-dense block of x^T; o_ref: (2, TILE_N) of y^T.

    Pure VPU broadcast FMAs with scalar (immediate) weights, no MXU.
    """
    x0 = x_ref[0:1, :]           # (1, TILE_N) — feature 0 across the batch
    x1 = x_ref[1:2, :]           # (1, TILE_N) — feature 1 across the batch

    # Hidden layer: h_k = relu(w1[0,k]*x0 + w1[1,k]*x1)   (3 lanes-wide FMAs)
    hs = []
    for k in range(3):
        h = W1[0][k] * x0 + W1[1][k] * x1
        hs.append(jnp.maximum(h, 0.0))

    # Output layer: y_j = sum_k w2[k,j] * h_k  (zero coeffs skipped at trace time)
    ys = []
    for j in range(2):
        acc = None
        for k in range(3):
            c = W2[k][j]
            if c == 0.0:
                continue
            if c == 1.0:
                term = hs[k]
            elif c == -1.0:
                term = -hs[k]
            else:
                term = c * hs[k]
            acc = term if acc is None else acc + term
        if acc is None:
            acc = jnp.zeros_like(x0)
        ys.append(acc)

    # Single full-block, lane-dense store.
    o_ref[...] = jnp.concatenate(ys, axis=0).astype(o_ref.dtype)


def net_forward_pallas(x, *, tile_n=1024):
    """Forward pass via Pallas. x: (N, 2) f32 -> (N, 2) f32."""
    n = x.shape[0]
    xt = x.T.astype(jnp.float32)                       # (2, N), lane-dense in N

    # Lane axis must tile by 128; cap tile so buffers stay far under v7x VMEM.
    n_pad128 = 128 * pl.cdiv(n, 128)
    tile = min(tile_n, n_pad128)                       # multiple of 128
    n_pad = tile * pl.cdiv(n, tile)
    if n_pad != n:
        xt = jnp.pad(xt, ((0, 0), (0, n_pad - n)))

    yt = pl.pallas_call(
        _net_kernel,
        out_shape=jax.ShapeDtypeStruct((2, n_pad), jnp.float32),
        grid=(n_pad // tile,),
        in_specs=[pl.BlockSpec((2, tile), lambda i: (0, i))],
        out_specs=pl.BlockSpec((2, tile), lambda i: (0, i)),
        compiler_params=pltpu.CompilerParams(
            dimension_semantics=("parallel",)),
    )(xt)

    return yt[:, :n].T


def net_forward(x, *, min_pallas_n=4096, tile_n=1024):
    """Dispatcher: tiny batches go straight to XLA (pallas_call overhead
    dwarfs the ~80 FLOPs of real work); large batches use the Pallas path."""
    if x.shape[0] < min_pallas_n:
        return reference_forward(x)
    return net_forward_pallas(x, tile_n=tile_n)


def reference_forward(x):
    return jnp.maximum(x @ W1_ARR, 0.0) @ W2_ARR


if __name__ == "__main__":
    key = jax.random.PRNGKey(0)
    k_small, k_big = jax.random.split(key, 2)

    # Small batch (matches the module's 2-feature input) — force the Pallas
    # path to exercise the kernel even though the dispatcher would use XLA.
    x_small = jax.random.normal(k_small, (8, 2), dtype=jnp.float32)
    y_small = jax.block_until_ready(net_forward_pallas(x_small))
    y_small_ref = reference_forward(x_small)
    assert y_small.shape == (8, 2)
    assert jnp.allclose(y_small, y_small_ref, atol=1e-6), "small-batch mismatch"

    # Multi-tile batch to exercise the parallel grid (grid=(4,), tile=512).
    x_big = jax.random.normal(k_big, (2048, 2), dtype=jnp.float32)
    y_big = jax.block_until_ready(net_forward_pallas(x_big, tile_n=512))
    y_big_ref = reference_forward(x_big)
    assert y_big.shape == (2048, 2)
    assert jnp.allclose(y_big, y_big_ref, atol=1e-6), "tiled-batch mismatch"

    print("KERNEL_OK")
</pallas_src>

<mosaic_0001>
module attributes {stable_mosaic.version = 11 : i64} {
  func.func @_net_kernel(%arg0: i32, %arg1: memref<2x128xf32, #tpu.memory_space<vmem>>, %arg2: memref<2x128xf32, #tpu.memory_space<vmem>>) attributes {dimension_semantics = [#tpu.dimension_semantics<parallel>], iteration_bounds = array<i64: 1>, scalar_prefetch = 0 : i64, scratch_operands = 0 : i64, tpu.core_type = #tpu.core_type<tc>, window_params = [{transform_indices = @transform_0, window_bounds = array<i64: 2, 128>}, {transform_indices = @transform_1, window_bounds = array<i64: 2, 128>}]} {
    %c0 = arith.constant 0 : index
    %c0_0 = arith.constant 0 : index
    %0 = vector.load %arg1[%c0, %c0_0] : memref<2x128xf32, #tpu.memory_space<vmem>>, vector<1x128xf32>
    %c1 = arith.constant 1 : index
    %c0_1 = arith.constant 0 : index
    %1 = vector.load %arg1[%c1, %c0_1] : memref<2x128xf32, #tpu.memory_space<vmem>>, vector<1x128xf32>
    %cst = arith.constant 1.000000e+00 : f32
    %2 = vector.broadcast %cst : f32 to vector<1x128xf32>
    %3 = arith.mulf %2, %0 : vector<1x128xf32>
    %cst_2 = arith.constant 1.000000e+00 : f32
    %4 = vector.broadcast %cst_2 : f32 to vector<1x128xf32>
    %5 = arith.mulf %4, %1 : vector<1x128xf32>
    %6 = arith.addf %3, %5 : vector<1x128xf32>
    %cst_3 = arith.constant 0.000000e+00 : f32
    %7 = vector.broadcast %cst_3 : f32 to vector<1x128xf32>
    %8 = arith.maximumf %6, %7 : vector<1x128xf32>
    %cst_4 = arith.constant 1.000000e+00 : f32
    %9 = vector.broadcast %cst_4 : f32 to vector<1x128xf32>
    %10 = arith.mulf %9, %0 : vector<1x128xf32>
    %cst_5 = arith.constant -1.000000e+00 : f32
    %11 = vector.broadcast %cst_5 : f32 to vector<1x128xf32>
    %12 = arith.mulf %11, %1 : vector<1x128xf32>
    %13 = arith.addf %10, %12 : vector<1x128xf32>
    %cst_6 = arith.constant 0.000000e+00 : f32
    %14 = vector.broadcast %cst_6 : f32 to vector<1x128xf32>
    %15 = arith.maximumf %13, %14 : vector<1x128xf32>
    %cst_7 = arith.constant 1.000000e+00 : f32
    %16 = vector.broadcast %cst_7 : f32 to vector<1x128xf32>
    %17 = arith.mulf %16, %0 : vector<1x128xf32>
    %cst_8 = arith.constant 1.000000e+00 : f32
    %18 = vector.broadcast %cst_8 : f32 to vector<1x128xf32>
    %19 = arith.mulf %18, %1 : vector<1x128xf32>
    %20 = arith.addf %17, %19 : vector<1x128xf32>
    %cst_9 = arith.constant 0.000000e+00 : f32
    %21 = vector.broadcast %cst_9 : f32 to vector<1x128xf32>
    %22 = arith.maximumf %20, %21 : vector<1x128xf32>
    %cst_10 = arith.constant 0.000000e+00 : f32
    %23 = vector.broadcast %cst_10 : f32 to vector<1x128xf32>
    %24 = arith.subf %23, %15 : vector<1x128xf32>
    %25 = arith.addf %8, %24 : vector<1x128xf32>
    %26 = arith.addf %15, %22 : vector<1x128xf32>
    %27 = tpu.concatenate %25, %26 in 0 : vector<1x128xf32>, vector<1x128xf32> -> vector<2x128xf32>
    %c0_11 = arith.constant 0 : index
    %c0_12 = arith.constant 0 : index
    %28 = vector.load %arg2[%c0_11, %c0_12] : memref<2x128xf32, #tpu.memory_space<vmem>>, vector<2x128xf32>
    tpu.vector_store %arg2[%c0_11, %c0_12], %27 {strides = array<i32>} : memref<2x128xf32, #tpu.memory_space<vmem>>, vector<2x128xf32>,
    return
  }
  func.func @transform_0(%arg0: i32) -> (i32, i32) {
    %c0_i32 = arith.constant 0 : i32
    %c0_i32_0 = arith.constant 0 : i32
    return %c0_i32, %arg0 : i32, i32
  }
  func.func @transform_1(%arg0: i32) -> (i32, i32) {
    %c0_i32 = arith.constant 0 : i32
    %c0_i32_0 = arith.constant 0 : i32
    return %c0_i32, %arg0 : i32, i32
  }
}

</mosaic_0001>

<bundles_post_ra>
// kernel: tpu_custom_call.1
= control target key start
LH: loop header
LB: loop body
LE: loop exit
PB: predicated region body
PF: predicated region fallthrough
CT: control target
= control target key end

     0   :  { %6 = vsyncpa [#allocation3], 0  ;;  %s116_s0 = inlined_call_operand.hbm [shape: f32[2,128], index: 0, kind: input, shape index: {}]   ;;  %s117_s1 = inlined_call_operand.hbm [shape: f32[2,128], index: 1, kind: output, shape index: {}]  }
   0x1   :  { %7 = vsyncpa [#allocation4], 0  ;;  %s98_s6 = smov [#allocation2]  }
   0x2   :  { %s14_s7 = sshll.u32 %s98_s6, 4  ;;  %s15_s7 = int_to_ptr.vmem [resolvable:$true] %s14_s7 }
   0x3   :  { %s62_s8 = scalar_lea.vmem %s15_s7, 32  ;;  %p67_p1 = scmp.lt.s32.totalorder %s15_s7, %s15_s7 }
   0x4   :  { %p63_p0 = scmp.ne.s32.totalorder %s15_s7, %s62_s8  ;;  %p68_p2 = scmp.lt.s32.totalorder %s62_s8, %s62_s8 }
   0x6   :  { %p69_p3 = por %p68_p2, %p67_p1 }
   0x8   :  { %p70_p4 = pnand %p69_p3, %p63_p0 }
   0xa   :  { %73 = shalt.err (!%p70_p4)
}
   0xb   :  { %17 = dma.hbm_to_vmem [thread:$0]  %s116_s0, 32, %s15_s7, [#allocation3]  }
   0xc   :  { %94 = dma.done.wait [#allocation3], 32  }
   0xd   :  { %95 = vsyncadd [#allocation3], 4294967264  ;;  %v21_v0 = vld [vmem:[#allocation2] sm:$0x1]  ;;  %v22_v1 = vld [vmem:[#allocation2 + $0x1] sm:$0x1] }
   0xe   :  { %v23_v2 = vadd.f32 %v22_v1, %v21_v0  ;;  %v25_v3 = vmul.f32 -1.0, %v22_v1  ;;  %s99_s11 = smov [#allocation5]   ;;  %vm34_vm0 = vcmask 1040384  }
   0xf   :  { %s43_s12 = sshll.u32 %s99_s11, 4  ;;  %s44_s12 = int_to_ptr.vmem [resolvable:$true] %s43_s12 }
  0x10   :  { %v24_v4 = vmax.f32 %v23_v2, 0.0  ;;  %v26_v5 = vadd.f32 %v25_v3, %v21_v0  ;;  %s74_s0 = scalar_lea.vmem %s44_s12, 32  ;;  %p79_p6 = scmp.lt.s32.totalorder %s44_s12, %s44_s12 }
  0x11   :  { %p75_p5 = scmp.ne.s32.totalorder %s44_s12, %s74_s0  ;;  %p80_p7 = scmp.lt.s32.totalorder %s74_s0, %s74_s0 }
  0x12   :  { %v27_v6 = vmax.f32 %v26_v5, 0.0 }
  0x13   :  { %p81_p8 = por %p80_p7, %p79_p6 }
  0x14   :  { %v28_v7 = vsub.f32 0.0, %v27_v6  ;;  %v30_v8 = vadd.f32 %v27_v6, %v24_v4 }
  0x15   :  { %p82_p9 = pnand %p81_p8, %p75_p5 }
  0x16   :  { %v29_v9 = vadd.f32 %v28_v7, %v24_v4  ;;  %v32_v10 = vrot.slane %v30_v8, 7 }
  0x18   :  { %v35_v11 = vsel %vm34_vm0, %v29_v9, %v32_v10 }
  0x19   :  { %36 = vst [vmem:[#allocation5] sm:$0x3] %v35_v11 }
  0x1a   :  { %85 = shalt.err (!%p82_p9)
}
  0x1b   :  { %46 = dma.vmem_to_hbm [thread:$0]  %s44_s12, 32, %s117_s1, [#allocation4]  }
  0x1c   :  { %96 = dma.done.wait [#allocation4], 32  }
  0x1d   :  { %97 = vsyncadd [#allocation4], 4294967264 }
  0x1e   :  { %50 = vsyncpa [#allocation3], 1 }
  0x1f   :  { %51 = vsyncpa [#allocation4], 1 }

</bundles_post_ra>
